<compile_context>
chip_gen: v7x
topology: tpu7x:2x2x1
jax: 0.10.0
libtpu: 0.0.40
codegen_flags: <defaults>
</compile_context>

<pallas_src>
import functools

import jax
import jax.numpy as jnp
from jax.experimental import pallas as pl
from jax.experimental.pallas import tpu as pltpu


# VMEM budget: safe across v5e/v6e (128 MiB physical) and v7x (64 MiB physical).
_VMEM_LIMIT_BYTES = 40 * 1024 * 1024
# Per-sample (C, H*W) slab threshold for the fused single-pass kernel
# (x + y double-buffered ~= 4x slab -> <= ~24 MiB, inside the limit on all gens).
_FUSED_SLAB_BYTES = 6 * 1024 * 1024
# Streaming-path per-operand block budgets (Pallas double-buffers each operand).
_POOL_BLOCK_BYTES = 6 * 1024 * 1024      # pool pass streams x only
_APPLY_BLOCK_BYTES = 4 * 1024 * 1024     # apply pass streams x in, y + s out
# Keep in-kernel live vector values around <= 32 vregs (128 KiB of f32).
_STRIP_VALUE_BYTES = 128 * 1024


def _pick_hw_tile(hw, c, itemsize, max_block_bytes):
    """Largest hw tile that divides H*W, is a multiple of 128 (or == H*W), and keeps a
    (C, hw_tile) block under the per-operand VMEM budget."""
    if hw % 128 != 0:
        # TODO(synk): for large non-128-aligned spatial extents a padded/masked last
        # tile would be needed; all spatial dims in this generator are powers of two.
        return hw
    cap = (max_block_bytes // max(1, c * itemsize)) // 128 * 128
    cap = max(128, cap)
    if hw <= cap:
        return hw
    t = cap
    while t >= 128:
        if hw % t == 0:
            return t
        t -= 128
    return 128  # hw is a multiple of 128, so this always divides


def _check_hw_tile(hw, hw_tile):
    if hw % hw_tile != 0:
        raise ValueError(f"hw_tile={hw_tile} must divide H*W={hw}")
    if hw_tile != hw and hw_tile % 128 != 0:
        raise ValueError(f"hw_tile={hw_tile} must be a multiple of 128 (or equal H*W)")


def _pick_strip(hw_tile, c):
    """Lane width processed per inner-loop step: a multiple of 128 dividing hw_tile,
    sized so a (C, strip) f32 value stays roughly within the vreg file."""
    if hw_tile % 128 != 0:
        return hw_tile
    cap = max(128, (_STRIP_VALUE_BYTES // (max(1, c) * 4)) // 128 * 128)
    strip = min(hw_tile, cap, 512)
    while hw_tile % strip != 0:
        strip -= 128
    return max(strip, 128)


# --------------------------------------------------------------------------------------
# Fused single-pass kernel: pooled mean -> shared MLP + sigmoid -> apply + spatial pools
# --------------------------------------------------------------------------------------
def _cbam_chan_fused_kernel(x_ref, w1t_ref, w2_ref, y_ref, s_ref, att_ref, psum_ref,
                            *, inv_hw, inv_c, strip):
    hw = x_ref.shape[-1]

    # ---- streaming per-channel mean over H*W (VPU lane folds, one final XLU reduce) --
    if strip % 128 == 0:
        folds = strip // 128
        psum_ref[...] = jnp.zeros_like(psum_ref)

        @pl.loop(0, hw // strip)
        def _accum(si):
            base = pl.multiple_of(si * strip, strip)
            part = x_ref[:, pl.ds(base, 128)].astype(jnp.float32)
            for k in range(1, folds):
                off = pl.multiple_of(base + k * 128, 128)
                part = part + x_ref[:, pl.ds(off, 128)].astype(jnp.float32)
            psum_ref[...] += part

        pooled = jnp.sum(psum_ref[...], axis=-1, keepdims=True) * inv_hw      # (C, 1)
    else:  # tiny / non-128-aligned spatial extent: single reduce
        pooled = jnp.sum(x_ref[...].astype(jnp.float32), axis=-1, keepdims=True) * inv_hw

    # ---- shared MLP + sigmoid on VPU/XLU (no width-1 MXU matmul in the epilogue). ----
    # Both pool branches of the reference module are AdaptiveAvgPool2d(1), so
    # shared_mlp(avg) + shared_mlp(max) == 2 * shared_mlp(avg) exactly.
    w1t = w1t_ref[...].astype(jnp.float32)                                     # (C, Cr)
    w2 = w2_ref[...].astype(jnp.float32)                                       # (C, Cr)
    hid = jnp.maximum(jnp.sum(w1t * pooled, axis=0, keepdims=True), 0.0)       # (1, Cr)
    att = jax.nn.sigmoid(2.0 * jnp.sum(w2 * hid, axis=1, keepdims=True))       # (C, 1)
    att_ref[...] = att

    # ---- apply + fused SpatialAttention pooling inputs, strip by strip --------------
    @pl.loop(0, hw // strip)
    def _apply(si):
        if strip % 128 == 0:
            off = pl.multiple_of(si * strip, strip)
        else:
            off = si * strip
        xs = x_ref[:, pl.ds(off, strip)].astype(jnp.float32)
        ys = (xs * att).astype(y_ref.dtype)
        y_ref[:, pl.ds(off, strip)] = ys
        ysf = ys.astype(jnp.float32)          # pool the stored (cast) activation
        s_pair = jnp.concatenate(
            [jnp.sum(ysf, axis=0, keepdims=True) * inv_c,
             jnp.max(ysf, axis=0, keepdims=True)], axis=0)                     # (2, strip)
        s_ref[:, pl.ds(off, strip)] = s_pair.astype(s_ref.dtype)


def _cbam_channel_stage_fused(x, w1m, w2m):
    N, C, H, W = x.shape
    HW = H * W
    Cr = w1m.shape[0]
    itemsize = jnp.dtype(x.dtype).itemsize
    strip = _pick_strip(HW, C)
    psum_w = 128 if strip % 128 == 0 else 1

    x_flat = x.reshape(N, C, HW)
    w1t = jnp.transpose(w1m).astype(jnp.float32)        # (C, Cr)
    w2f = w2m.astype(jnp.float32)                       # (C, Cr)

    kernel = functools.partial(_cbam_chan_fused_kernel, inv_hw=1.0 / float(HW),
                               inv_c=1.0 / float(C), strip=strip)
    cost = pl.CostEstimate(
        flops=int(6 * N * C * HW + 4 * N * C * Cr),
        transcendentals=int(N * C),
        bytes_accessed=int(2 * N * C * HW * itemsize + 2 * N * HW * itemsize))

    y, s, att = pl.pallas_call(
        kernel,
        out_shape=(jax.ShapeDtypeStruct((N, C, HW), x.dtype),
                   jax.ShapeDtypeStruct((N, 2, HW), x.dtype),
                   jax.ShapeDtypeStruct((N, C, 1), jnp.float32)),
        grid=(N,),
        in_specs=[pl.BlockSpec((pl.Squeezed(), C, HW), lambda n: (n, 0, 0)),
                  pl.BlockSpec((C, Cr), lambda n: (0, 0)),
                  pl.BlockSpec((C, Cr), lambda n: (0, 0))],
        out_specs=(pl.BlockSpec((pl.Squeezed(), C, HW), lambda n: (n, 0, 0)),
                   pl.BlockSpec((pl.Squeezed(), 2, HW), lambda n: (n, 0, 0)),
                   pl.BlockSpec((pl.Squeezed(), C, 1), lambda n: (n, 0, 0))),
        scratch_shapes=[pltpu.VMEM((C, psum_w), jnp.float32)],
        compiler_params=pltpu.CompilerParams(
            dimension_semantics=("parallel",),
            vmem_limit_bytes=_VMEM_LIMIT_BYTES),
        cost_estimate=cost,
    )(x_flat, w1t, w2f)
    return (y.reshape(N, C, H, W),
            att.reshape(N, C, 1, 1).astype(x.dtype),
            s.reshape(N, 2, H, W))


# --------------------------------------------------------------------------------------
# Streaming fallback, pass 1: per-channel pooled mean over H*W
# --------------------------------------------------------------------------------------
def _pooled_sum_kernel(x_ref, pooled_ref, psum_ref, *, inv_hw, strip):
    h = pl.program_id(1)
    hw_tile = x_ref.shape[-1]

    @pl.when(h == 0)
    def _init():
        psum_ref[...] = jnp.zeros_like(psum_ref)

    # Hot loop: ref-sliced 128-lane loads folded with VPU adds into (C, 128) partials.
    if strip % 128 == 0:
        folds = strip // 128

        @pl.loop(0, hw_tile // strip)
        def _accum(si):
            base = pl.multiple_of(si * strip, strip)
            part = x_ref[:, pl.ds(base, 128)].astype(jnp.float32)
            for k in range(1, folds):
                off = pl.multiple_of(base + k * 128, 128)
                part = part + x_ref[:, pl.ds(off, 128)].astype(jnp.float32)
            psum_ref[...] += part
    else:
        psum_ref[...] += jnp.sum(x_ref[...].astype(jnp.float32), axis=-1, keepdims=True)

    @pl.when(h == pl.num_programs(1) - 1)
    def _finalize():
        pooled_ref[...] = jnp.sum(psum_ref[...], axis=-1, keepdims=True) * inv_hw


def channel_pooled_mean(x, hw_tile=None):
    """x: (N, C, H, W) -> per-channel spatial mean (N, C) in f32 (streaming pool pass)."""
    # TODO(synk): on v7x with N==1 this grid leaves one of the two TensorCores idle; a
    # 2-way core-parallel HW split producing partial sums would recover it.
    N, C, H, W = x.shape
    HW = H * W
    itemsize = jnp.dtype(x.dtype).itemsize
    if hw_tile is None:
        hw_tile = _pick_hw_tile(HW, C, itemsize, _POOL_BLOCK_BYTES)
    _check_hw_tile(HW, hw_tile)
    num_hw = HW // hw_tile
    strip = _pick_strip(hw_tile, C)
    psum_w = 128 if strip % 128 == 0 else 1

    x_flat = x.reshape(N, C, HW)
    kernel = functools.partial(_pooled_sum_kernel, inv_hw=1.0 / float(HW), strip=strip)
    cost = pl.CostEstimate(flops=int(N * C * HW), transcendentals=0,
                           bytes_accessed=int(N * C * HW * itemsize + N * C * 4))
    pooled = pl.pallas_call(
        kernel,
        out_shape=jax.ShapeDtypeStruct((N, C, 1), jnp.float32),
        grid=(N, num_hw),
        in_specs=[pl.BlockSpec((pl.Squeezed(), C, hw_tile), lambda n, h: (n, 0, h))],
        out_specs=pl.BlockSpec((pl.Squeezed(), C, 1), lambda n, h: (n, 0, 0)),
        scratch_shapes=[pltpu.VMEM((C, psum_w), jnp.float32)],
        compiler_params=pltpu.CompilerParams(
            dimension_semantics=("parallel", "arbitrary"),
            vmem_limit_bytes=_VMEM_LIMIT_BYTES),
        cost_estimate=cost,
    )(x_flat)
    return pooled.reshape(N, C)


def _mlp_attention(pooled, w1m, w2m):
    """sigmoid(2 * shared_mlp(pooled)); both pool branches of the module are avg-pool."""
    hid = jnp.maximum(pooled @ w1m.astype(pooled.dtype).T, 0.0)    # (N, Cr)
    out = hid @ w2m.astype(pooled.dtype).T                          # (N, C)
    return jax.nn.sigmoid(2.0 * out)


# --------------------------------------------------------------------------------------
# Streaming fallback, pass 2: y = x * att  (+ merged [mean_c(y), max_c(y)] output)
# --------------------------------------------------------------------------------------
def _chan_apply_kernel(x_ref, att_ref, y_ref, s_ref, *, strip, inv_c):
    hw_tile = x_ref.shape[-1]
    a = att_ref[...]                                    # (C, 1) f32, lane-broadcast

    @pl.loop(0, hw_tile // strip)
    def _apply(si):
        if strip % 128 == 0:
            off = pl.multiple_of(si * strip, strip)
        else:
            off = si * strip
        xs = x_ref[:, pl.ds(off, strip)].astype(jnp.float32)
        ys = (xs * a).astype(y_ref.dtype)
        y_ref[:, pl.ds(off, strip)] = ys
        ysf = ys.astype(jnp.float32)                    # pool the stored (cast) y
        s_pair = jnp.concatenate(
            [jnp.sum(ysf, axis=0, keepdims=True) * inv_c,
             jnp.max(ysf, axis=0, keepdims=True)], axis=0)
        s_ref[:, pl.ds(off, strip)] = s_pair.astype(s_ref.dtype)


def channel_attention_apply(x, att, hw_tile=None):
    """x: (N,C,H,W); att: (N,C)-like f32 -> (y=(N,C,H,W), s=[mean_c(y),max_c(y)] (N,2,H,W))."""
    N, C, H, W = x.shape
    HW = H * W
    itemsize = jnp.dtype(x.dtype).itemsize
    if hw_tile is None:
        hw_tile = _pick_hw_tile(HW, C, itemsize, _APPLY_BLOCK_BYTES)
    _check_hw_tile(HW, hw_tile)
    num_hw = HW // hw_tile
    strip = _pick_strip(hw_tile, C)

    x_flat = x.reshape(N, C, HW)
    att32 = att.reshape(N, C, 1).astype(jnp.float32)
    kernel = functools.partial(_chan_apply_kernel, strip=strip, inv_c=1.0 / float(C))
    cost = pl.CostEstimate(
        flops=int(4 * N * C * HW), transcendentals=0,
        bytes_accessed=int(2 * N * C * HW * itemsize + 2 * N * HW * itemsize))
    y, s = pl.pallas_call(
        kernel,
        out_shape=(jax.ShapeDtypeStruct((N, C, HW), x.dtype),
                   jax.ShapeDtypeStruct((N, 2, HW), x.dtype)),
        grid=(N, num_hw),
        in_specs=[pl.BlockSpec((pl.Squeezed(), C, hw_tile), lambda n, h: (n, 0, h)),
                  pl.BlockSpec((pl.Squeezed(), C, 1), lambda n, h: (n, 0, 0))],
        out_specs=(pl.BlockSpec((pl.Squeezed(), C, hw_tile), lambda n, h: (n, 0, h)),
                   pl.BlockSpec((pl.Squeezed(), 2, hw_tile), lambda n, h: (n, 0, h))),
        compiler_params=pltpu.CompilerParams(
            dimension_semantics=("parallel", "parallel"),
            vmem_limit_bytes=_VMEM_LIMIT_BYTES),
        cost_estimate=cost,
    )(x_flat, att32)
    return y.reshape(N, C, H, W), s.reshape(N, 2, H, W)


# --------------------------------------------------------------------------------------
# Public wrappers
# --------------------------------------------------------------------------------------
def channel_attention(x, w1, w2, hw_tile=None):
    """Drop-in for ChannelAttention.forward: sigmoid weights, shape (N, C, 1, 1)."""
    N, C = x.shape[0], x.shape[1]
    Cr = w1.shape[0]
    pooled = channel_pooled_mean(x, hw_tile)                         # (N, C) f32
    att = _mlp_attention(pooled, w1.reshape(Cr, C), w2.reshape(C, Cr))
    return att.reshape(N, C, 1, 1).astype(x.dtype)


def cbam_channel_stage(x, w1, w2, *, hw_tile=None, force_streaming=False):
    """Channel-attention half of CBAM: y = x * channel_attention(x), plus the
    pre-concatenated [mean_c(y), max_c(y)] (N, 2, H, W) map that SpatialAttention's
    7x7 conv consumes next.  Returns (y, att (N,C,1,1), s).

    # TODO(synk): SpatialAttention's 7x7 conv + sigmoid + second elementwise apply,
    # and the surrounding UNet Conv2d/ConvTranspose2d/InstanceNorm2d/Dropout backbone,
    # are left to XLA; only the CBAM channel-attention stage is hand-written here.
    """
    N, C, H, W = x.shape
    Cr = w1.shape[0]
    HW = H * W
    w1m = w1.reshape(Cr, C)
    w2m = w2.reshape(C, Cr)
    slab_bytes = C * HW * jnp.dtype(x.dtype).itemsize
    if (not force_streaming) and hw_tile is None and slab_bytes <= _FUSED_SLAB_BYTES:
        return _cbam_channel_stage_fused(x, w1m, w2m)
    # Streaming two-pass fallback for big per-sample feature maps.
    pooled = channel_pooled_mean(x, hw_tile)                          # (N, C) f32
    att = _mlp_attention(pooled, w1m, w2m)                            # (N, C) f32
    y, s = channel_attention_apply(x, att, hw_tile)
    return y, att.reshape(N, C, 1, 1).astype(x.dtype), s


if __name__ == "__main__":
    # CBAM sites in UNetCBAMGenerator use reduction=16, so C must be >= 16.
    N, C, H, W = 2, 64, 32, 32
    reduction = 16
    Cr = C // reduction

    key = jax.random.PRNGKey(0)
    kx, k1, k2 = jax.random.split(key, 3)
    x = jax.random.normal(kx, (N, C, H, W), dtype=jnp.float32)
    w1 = 0.1 * jax.random.normal(k1, (Cr, C, 1, 1), dtype=jnp.float32)  # Conv2d (Cr,C,1,1)
    w2 = 0.1 * jax.random.normal(k2, (C, Cr, 1, 1), dtype=jnp.float32)  # Conv2d (C,Cr,1,1)

    def reference(xv, w1v, w2v):
        crr, cc = w1v.shape[0], w1v.shape[1]
        pooled = jnp.mean(xv, axis=(2, 3))
        mlp = lambda p: jnp.maximum(p @ w1v.reshape(crr, cc).T, 0.0) @ w2v.reshape(cc, crr).T
        att_e = jax.nn.sigmoid(mlp(pooled) + mlp(pooled))      # both pools are avg-pool
        y_e = xv * att_e[:, :, None, None]
        s_e = jnp.concatenate([jnp.mean(y_e, axis=1, keepdims=True),
                               jnp.max(y_e, axis=1, keepdims=True)], axis=1)
        return y_e, att_e, s_e

    y_exp, att_exp, s_exp = reference(x, w1, w2)

    # 1) fused single-pass kernel (per-sample slab fits VMEM)
    y, att, s = cbam_channel_stage(x, w1, w2)
    jax.block_until_ready((y, att, s))
    assert y.shape == (N, C, H, W) and att.shape == (N, C, 1, 1) and s.shape == (N, 2, H, W)
    assert jnp.allclose(att.reshape(N, C), att_exp, atol=1e-4, rtol=1e-4)
    assert jnp.allclose(y, y_exp, atol=1e-4, rtol=1e-3)
    assert jnp.allclose(s, s_exp, atol=1e-4, rtol=1e-3)

    # 2) streaming two-pass fallback (forced), with a small hw_tile so the HW reduction
    #    really runs over multiple grid steps.
    y2, att2, s2 = cbam_channel_stage(x, w1, w2, hw_tile=256, force_streaming=True)
    jax.block_until_ready((y2, att2, s2))
    assert jnp.allclose(att2.reshape(N, C), att_exp, atol=1e-4, rtol=1e-4)
    assert jnp.allclose(y2, y_exp, atol=1e-4, rtol=1e-3)
    assert jnp.allclose(s2, s_exp, atol=1e-4, rtol=1e-3)

    # 3) tiny, non-128-aligned spatial extent (like the innermost CBAM sites, 2x2/4x4)
    N3, C3, H3, W3 = 1, 32, 4, 4
    Cr3 = max(1, C3 // reduction)
    x3 = jax.random.normal(jax.random.PRNGKey(1), (N3, C3, H3, W3), dtype=jnp.float32)
    w13 = 0.1 * jax.random.normal(jax.random.PRNGKey(2), (Cr3, C3, 1, 1), dtype=jnp.float32)
    w23 = 0.1 * jax.random.normal(jax.random.PRNGKey(3), (C3, Cr3, 1, 1), dtype=jnp.float32)
    y3, att3, s3 = cbam_channel_stage(x3, w13, w23)
    jax.block_until_ready((y3, att3, s3))
    y3e, att3e, s3e = reference(x3, w13, w23)
    assert jnp.allclose(att3.reshape(N3, C3), att3e, atol=1e-4, rtol=1e-4)
    assert jnp.allclose(y3, y3e, atol=1e-4, rtol=1e-3)
    assert jnp.allclose(s3, s3e, atol=1e-4, rtol=1e-3)

    # 4) drop-in ChannelAttention.forward parity
    ca = channel_attention(x, w1, w2)
    jax.block_until_ready(ca)
    assert jnp.allclose(ca.reshape(N, C), att_exp, atol=1e-4, rtol=1e-4)

    print("KERNEL_OK")
</pallas_src>

<mosaic_0001>
module attributes {stable_mosaic.version = 11 : i64} {
  func.func @_cbam_chan_fused_kernel(%arg0: i32, %arg1: memref<1x64x1024xf32, #tpu.memory_space<vmem>>, %arg2: memref<64x4xf32, #tpu.memory_space<vmem>>, %arg3: memref<64x4xf32, #tpu.memory_space<vmem>>, %arg4: memref<1x64x1024xf32, #tpu.memory_space<vmem>>, %arg5: memref<1x2x1024xf32, #tpu.memory_space<vmem>>, %arg6: memref<1x64x1xf32, #tpu.memory_space<vmem>>, %arg7: memref<64x128xf32, #tpu.memory_space<vmem>>) attributes {dimension_semantics = [#tpu.dimension_semantics<parallel>], iteration_bounds = array<i64: 2>, scalar_prefetch = 0 : i64, scratch_operands = 1 : i64, tpu.core_type = #tpu.core_type<tc>, window_params = [{transform_indices = @transform_0, window_bounds = array<i64: 1, 64, 1024>}, {pipeline_mode = #tpu.pipeline_mode<synchronous>, transform_indices = @transform_1, window_bounds = array<i64: 64, 4>}, {pipeline_mode = #tpu.pipeline_mode<synchronous>, transform_indices = @transform_2, window_bounds = array<i64: 64, 4>}, {transform_indices = @transform_3, window_bounds = array<i64: 1, 64, 1024>}, {transform_indices = @transform_4, window_bounds = array<i64: 1, 2, 1024>}, {transform_indices = @transform_5, window_bounds = array<i64: 1, 64, 1>}]} {
    %cst = arith.constant 0.000000e+00 : f32
    %0 = vector.broadcast %cst : f32 to vector<64x128xf32>
    %c0 = arith.constant 0 : index
    %c0_0 = arith.constant 0 : index
    %1 = vector.load %arg7[%c0, %c0_0] : memref<64x128xf32, #tpu.memory_space<vmem>>, vector<64x128xf32>
    tpu.vector_store %arg7[%c0, %c0_0], %0 {strides = array<i32>} : memref<64x128xf32, #tpu.memory_space<vmem>>, vector<64x128xf32>,
    %c0_i32 = arith.constant 0 : i32
    %c2_i32 = arith.constant 2 : i32
    %2 = arith.addi %c0_i32, %c2_i32 : i32
    %c1_i32 = arith.constant 1 : i32
    scf.for %arg8 = %c0_i32 to %2 step %c1_i32  : i32 {
      %c1_i32_22 = arith.constant 1 : i32
      %31 = arith.muli %arg8, %c1_i32_22 : i32
      %c0_i32_23 = arith.constant 0 : i32
      %32 = arith.addi %c0_i32_23, %31 : i32
      %c512_i32 = arith.constant 512 : i32
      %33 = arith.muli %32, %c512_i32 : i32
      %34 = tpu.assume_multiple %33, 512 : i32
      %c0_24 = arith.constant 0 : index
      %c0_25 = arith.constant 0 : index
      %35 = arith.index_cast %34 : i32 to index
      %36 = vector.load %arg1[%c0_24, %c0_25, %35] : memref<1x64x1024xf32, #tpu.memory_space<vmem>>, vector<1x64x128xf32>
      %37 = vector.shape_cast %36 : vector<1x64x128xf32> to vector<64x128xf32>
      %c128_i32 = arith.constant 128 : i32
      %38 = arith.addi %34, %c128_i32 : i32
      %39 = tpu.assume_multiple %38, 128 : i32
      %c0_26 = arith.constant 0 : index
      %c0_27 = arith.constant 0 : index
      %40 = arith.index_cast %39 : i32 to index
      %41 = vector.load %arg1[%c0_26, %c0_27, %40] : memref<1x64x1024xf32, #tpu.memory_space<vmem>>, vector<1x64x128xf32>
      %42 = vector.shape_cast %41 : vector<1x64x128xf32> to vector<64x128xf32>
      %43 = arith.addf %37, %42 : vector<64x128xf32>
      %c256_i32 = arith.constant 256 : i32
      %44 = arith.addi %34, %c256_i32 : i32
      %45 = tpu.assume_multiple %44, 128 : i32
      %c0_28 = arith.constant 0 : index
      %c0_29 = arith.constant 0 : index
      %46 = arith.index_cast %45 : i32 to index
      %47 = vector.load %arg1[%c0_28, %c0_29, %46] : memref<1x64x1024xf32, #tpu.memory_space<vmem>>, vector<1x64x128xf32>
      %48 = vector.shape_cast %47 : vector<1x64x128xf32> to vector<64x128xf32>
      %49 = arith.addf %43, %48 : vector<64x128xf32>
      %c384_i32 = arith.constant 384 : i32
      %50 = arith.addi %34, %c384_i32 : i32
      %51 = tpu.assume_multiple %50, 128 : i32
      %c0_30 = arith.constant 0 : index
      %c0_31 = arith.constant 0 : index
      %52 = arith.index_cast %51 : i32 to index
      %53 = vector.load %arg1[%c0_30, %c0_31, %52] : memref<1x64x1024xf32, #tpu.memory_space<vmem>>, vector<1x64x128xf32>
      %54 = vector.shape_cast %53 : vector<1x64x128xf32> to vector<64x128xf32>
      %55 = arith.addf %49, %54 : vector<64x128xf32>
      %c0_32 = arith.constant 0 : index
      %c0_33 = arith.constant 0 : index
      %56 = vector.load %arg7[%c0_32, %c0_33] : memref<64x128xf32, #tpu.memory_space<vmem>>, vector<64x128xf32>
      %57 = arith.addf %56, %55 : vector<64x128xf32>
      %c0_34 = arith.constant 0 : index
      %c0_35 = arith.constant 0 : index
      %58 = vector.load %arg7[%c0_34, %c0_35] : memref<64x128xf32, #tpu.memory_space<vmem>>, vector<64x128xf32>
      tpu.vector_store %arg7[%c0_34, %c0_35], %57 {strides = array<i32>} : memref<64x128xf32, #tpu.memory_space<vmem>>, vector<64x128xf32>,
    }
    %c2_i32_1 = arith.constant 2 : i32
    %c0_2 = arith.constant 0 : index
    %c0_3 = arith.constant 0 : index
    %3 = vector.load %arg7[%c0_2, %c0_3] : memref<64x128xf32, #tpu.memory_space<vmem>>, vector<64x128xf32>
    %cst_4 = arith.constant dense<0.000000e+00> : vector<64xf32>
    %4 = vector.multi_reduction <add>, %3, %cst_4 [1] : vector<64x128xf32> to vector<64xf32>
    %5 = vector.shape_cast %4 : vector<64xf32> to vector<64x1xf32>
    %cst_5 = arith.constant 9.765625E-4 : f32
    %6 = vector.broadcast %cst_5 : f32 to vector<64x1xf32>
    %7 = arith.mulf %5, %6 : vector<64x1xf32>
    %c0_6 = arith.constant 0 : index
    %c0_7 = arith.constant 0 : index
    %8 = vector.load %arg2[%c0_6, %c0_7] : memref<64x4xf32, #tpu.memory_space<vmem>>, vector<64x4xf32>
    %c0_8 = arith.constant 0 : index
    %c0_9 = arith.constant 0 : index
    %9 = vector.load %arg3[%c0_8, %c0_9] : memref<64x4xf32, #tpu.memory_space<vmem>>, vector<64x4xf32>
    %10 = vector.broadcast %7 : vector<64x1xf32> to vector<64x4xf32>
    %11 = arith.mulf %8, %10 : vector<64x4xf32>
    %cst_10 = arith.constant dense<0.000000e+00> : vector<4xf32>
    %12 = vector.multi_reduction <add>, %11, %cst_10 [0] : vector<64x4xf32> to vector<4xf32>
    %13 = vector.shape_cast %12 : vector<4xf32> to vector<1x4xf32>
    %cst_11 = arith.constant 0.000000e+00 : f32
    %14 = vector.broadcast %cst_11 : f32 to vector<1x4xf32>
    %15 = arith.maximumf %13, %14 : vector<1x4xf32>
    %16 = vector.broadcast %15 : vector<1x4xf32> to vector<64x4xf32>
    %17 = arith.mulf %9, %16 : vector<64x4xf32>
    %cst_12 = arith.constant dense<0.000000e+00> : vector<64xf32>
    %18 = vector.multi_reduction <add>, %17, %cst_12 [1] : vector<64x4xf32> to vector<64xf32>
    %19 = vector.shape_cast %18 : vector<64xf32> to vector<64x1xf32>
    %cst_13 = arith.constant 2.000000e+00 : f32
    %20 = vector.broadcast %cst_13 : f32 to vector<64x1xf32>
    %21 = arith.mulf %20, %19 : vector<64x1xf32>
    %22 = arith.negf %21 : vector<64x1xf32>
    %23 = math.exp %22 : vector<64x1xf32>
    %cst_14 = arith.constant 1.000000e+00 : f32
    %24 = vector.broadcast %cst_14 : f32 to vector<64x1xf32>
    %25 = arith.addf %24, %23 : vector<64x1xf32>
    %26 = arith.divf %24, %25 : vector<64x1xf32>
    %c0_15 = arith.constant 0 : index
    %c0_16 = arith.constant 0 : index
    %c0_17 = arith.constant 0 : index
    %27 = vector.load %arg6[%c0_15, %c0_16, %c0_17] : memref<1x64x1xf32, #tpu.memory_space<vmem>>, vector<1x64x1xf32>
    %28 = vector.shape_cast %27 : vector<1x64x1xf32> to vector<64x1xf32>
    %29 = vector.shape_cast %26 : vector<64x1xf32> to vector<1x64x1xf32>
    tpu.vector_store %arg6[%c0_15, %c0_16, %c0_17], %29 {strides = array<i32>} : memref<1x64x1xf32, #tpu.memory_space<vmem>>, vector<1x64x1xf32>,
    %c0_i32_18 = arith.constant 0 : i32
    %c2_i32_19 = arith.constant 2 : i32
    %30 = arith.addi %c0_i32_18, %c2_i32_19 : i32
    %c1_i32_20 = arith.constant 1 : i32
    scf.for %arg8 = %c0_i32_18 to %30 step %c1_i32_20  : i32 {
      %c1_i32_22 = arith.constant 1 : i32
      %31 = arith.muli %arg8, %c1_i32_22 : i32
      %c0_i32_23 = arith.constant 0 : i32
      %32 = arith.addi %c0_i32_23, %31 : i32
      %c512_i32 = arith.constant 512 : i32
      %33 = arith.muli %32, %c512_i32 : i32
      %34 = tpu.assume_multiple %33, 512 : i32
      %c0_24 = arith.constant 0 : index
      %c0_25 = arith.constant 0 : index
      %35 = arith.index_cast %34 : i32 to index
      %36 = vector.load %arg1[%c0_24, %c0_25, %35] : memref<1x64x1024xf32, #tpu.memory_space<vmem>>, vector<1x64x512xf32>
      %37 = vector.shape_cast %36 : vector<1x64x512xf32> to vector<64x512xf32>
      %38 = vector.broadcast %26 : vector<64x1xf32> to vector<64x512xf32>
      %39 = arith.mulf %37, %38 : vector<64x512xf32>
      %c0_26 = arith.constant 0 : index
      %c0_27 = arith.constant 0 : index
      %40 = arith.index_cast %34 : i32 to index
      %41 = vector.load %arg4[%c0_26, %c0_27, %40] : memref<1x64x1024xf32, #tpu.memory_space<vmem>>, vector<1x64x512xf32>
      %42 = vector.shape_cast %41 : vector<1x64x512xf32> to vector<64x512xf32>
      %43 = vector.shape_cast %39 : vector<64x512xf32> to vector<1x64x512xf32>
      tpu.vector_store %arg4[%c0_26, %c0_27, %40], %43 {strides = array<i32>} : memref<1x64x1024xf32, #tpu.memory_space<vmem>>, vector<1x64x512xf32>,
      %cst_28 = arith.constant dense<0.000000e+00> : vector<512xf32>
      %44 = vector.multi_reduction <add>, %39, %cst_28 [0] : vector<64x512xf32> to vector<512xf32>
      %45 = vector.shape_cast %44 : vector<512xf32> to vector<1x512xf32>
      %cst_29 = arith.constant 1.562500e-02 : f32
      %46 = vector.broadcast %cst_29 : f32 to vector<1x512xf32>
      %47 = arith.mulf %45, %46 : vector<1x512xf32>
      %cst_30 = arith.constant dense<0xFF800000> : vector<512xf32>
      %48 = vector.multi_reduction <maximumf>, %39, %cst_30 [0] : vector<64x512xf32> to vector<512xf32>
      %49 = vector.shape_cast %48 : vector<512xf32> to vector<1x512xf32>
      %50 = tpu.concatenate %47, %49 in 0 : vector<1x512xf32>, vector<1x512xf32> -> vector<2x512xf32>
      %c0_31 = arith.constant 0 : index
      %c0_32 = arith.constant 0 : index
      %51 = arith.index_cast %34 : i32 to index
      %52 = vector.load %arg5[%c0_31, %c0_32, %51] : memref<1x2x1024xf32, #tpu.memory_space<vmem>>, vector<1x2x512xf32>
      %53 = vector.shape_cast %52 : vector<1x2x512xf32> to vector<2x512xf32>
      %54 = vector.shape_cast %50 : vector<2x512xf32> to vector<1x2x512xf32>
      tpu.vector_store %arg5[%c0_31, %c0_32, %51], %54 {strides = array<i32>} : memref<1x2x1024xf32, #tpu.memory_space<vmem>>, vector<1x2x512xf32>,
    }
    %c2_i32_21 = arith.constant 2 : i32
    return
  }
  func.func @transform_0(%arg0: i32) -> (i32, i32, i32) {
    %c0_i32 = arith.constant 0 : i32
    %c0_i32_0 = arith.constant 0 : i32
    %c0_i32_1 = arith.constant 0 : i32
    return %arg0, %c0_i32, %c0_i32_0 : i32, i32, i32
  }
  func.func @transform_1(%arg0: i32) -> (i32, i32) {
    %c0_i32 = arith.constant 0 : i32
    %c0_i32_0 = arith.constant 0 : i32
    %c0_i32_1 = arith.constant 0 : i32
    return %c0_i32, %c0_i32_0 : i32, i32
  }
  func.func @transform_2(%arg0: i32) -> (i32, i32) {
    %c0_i32 = arith.constant 0 : i32
    %c0_i32_0 = arith.constant 0 : i32
    %c0_i32_1 = arith.constant 0 : i32
    return %c0_i32, %c0_i32_0 : i32, i32
  }
  func.func @transform_3(%arg0: i32) -> (i32, i32, i32) {
    %c0_i32 = arith.constant 0 : i32
    %c0_i32_0 = arith.constant 0 : i32
    %c0_i32_1 = arith.constant 0 : i32
    return %arg0, %c0_i32, %c0_i32_0 : i32, i32, i32
  }
  func.func @transform_4(%arg0: i32) -> (i32, i32, i32) {
    %c0_i32 = arith.constant 0 : i32
    %c0_i32_0 = arith.constant 0 : i32
    %c0_i32_1 = arith.constant 0 : i32
    return %arg0, %c0_i32, %c0_i32_0 : i32, i32, i32
  }
  func.func @transform_5(%arg0: i32) -> (i32, i32, i32) {
    %c0_i32 = arith.constant 0 : i32
    %c0_i32_0 = arith.constant 0 : i32
    %c0_i32_1 = arith.constant 0 : i32
    return %arg0, %c0_i32, %c0_i32_0 : i32, i32, i32
  }
}

</mosaic_0001>

<bundles_post_ra>
// kernel: tpu_custom_call.1
= control target key start
LH: loop header
LB: loop body
LE: loop exit
PB: predicated region body
PF: predicated region fallthrough
CT: control target
= control target key end

     0   :  { %s1812_s0 = inlined_call_operand.hbm [shape: f32[2,64,1024], index: 0, kind: input, shape index: {}]   ;;  %s1813_s1 = inlined_call_operand.vmem [shape: f32[64,4], index: 1, kind: input, shape index: {}]   ;;  %s1814_s2 = inlined_call_operand.vmem [shape: f32[64,4], index: 2, kind: input, shape index: {}]   ;;  %s1815_s3 = inlined_call_operand.hbm [shape: f32[2,64,1024], index: 3, kind: output, shape index: {0}]   ;;  %s1816_s4 = inlined_call_operand.hbm [shape: f32[2,2,1024], index: 4, kind: output, shape index: {1}]   ;;  %s1817_s5 = inlined_call_operand.vmem [shape: f32[2,64,1], index: 5, kind: output, shape index: {2}]  }
   0x1   :  { %1819 = sst [smem:[#allocation12_spill]] %s1812_s0 }
   0x2   :  { %11 = vsyncpa [#allocation4], 0 }
   0x3   :  { %13 = vsyncpa [#allocation4 + $0x1], 0 }
   0x4   :  { %14 = vsyncpa [#allocation5], 0 }
   0x5   :  { %16 = vsyncpa [#allocation5 + $0x1], 0 }
   0x6   :  { %17 = vsyncpa [#allocation8], 0 }
   0x7   :  { %19 = vsyncpa [#allocation8 + $0x1], 0  ;;  %s1329_s18 = smov 0   ;;  %s1331_s19 = smov 0  }
   0x8   :  { %s1333_s20 = smov 0   ;;  %s1335_s21 = smov 0  }
   0x9 LB: > { %s1350_s22 = sadd.s32 4294967295, %s1280_s21   ;;  %s998_s23 = sadd.s32 4294967294, %s1280_s21   ;;  %s1280_s21 = sphi %s1335_s21, %s1832_s21   ;;  %s1276_s20 = sphi %s1333_s20, %s1831_s20   ;;  %s1272_s19 = sphi %s1331_s19, %s1830_s19   ;;  %s1268_s18 = sphi %s1329_s18, %s1829_s18  }
   0xa   : > { %s1354_s24 = sadd.s32 1, %s1280_s21   ;;  %s32_s25 = sadd.s32 1, %s1276_s20 }
   0xb   : > { %s29_s26 = ssub.s32 %s1280_s21, %s1354_s24  ;;  %p39_p0 = scmp.ne.s32.totalorder %s1276_s20, %s1272_s19 }
   0xc   : > { %p30_p1 = scmp.eq.s32.totalorder %s29_s26, 0  ;;  %p40_p2 = scmp.eq.s32.totalorder %s1280_s21, 0 }
   0xd   : > { %p45_p3 = scmp.ne.s32.totalorder %s1272_s19, %s1268_s18  ;;  %p46_p4 = scmp.eq.s32.totalorder %s1350_s22, 0 }
   0xe   : > { %s1366_s27 = scalar_select %p30_p1, %s1276_s20, %s32_s25  }
   0xf   : > { %p1368_p5 = por %p40_p2, %p39_p0  ;;  %p1372_p6 = por %p46_p4, %p45_p3 }
  0x10   : > { %p111_p7 = scmp.eq.s32.totalorder %s1350_s22, 1  ;;  %p117_p8 = scmp.eq.s32.totalorder %s998_s23, 1 }
  0x11   : > { %p1056_p10 = scmp.lt.s32.totalorder %s1280_s21, 2  ;;  %s195_s7 = sand.u32 1, %s1276_s20  }
  0x12   : > { %p1379_p11 = por %p111_p7, %p39_p0  ;;  %p1383_p12 = por %p117_p8, %p45_p3 }
  0x13   : > { %s1035_s8 = sshll.u32 %s1280_s21, 13  ;;  %s1001_s9 = sshll.u32 %s195_s7, 9 }
  0x14   : > { %s1822_s30 = scalar_select %p1379_p11, 1, 0 }
  0x15   : > { %s1823_s6 = scalar_select %p1383_p12, 1, 0 }
  0x16   : > { %s1824_s0 = sld [smem:[#allocation12_spill]]  ;;  %s199_s13 = scalar_lea.vmem [#allocation3], %s1001_s9 }
  0x17   : > { %s206_s14 = sshll.u32 %s199_s13, 4  ;;  %p1396_p13 = pnand %p1056_p10, %p1368_p5  ;;  %s1400_s14 = int_to_ptr.vmem [resolvable:$true] %s206_s14 }
  0x18   : > { %s1402_s16 = scalar_lea.sflag [#allocation4], %s195_s7 }
  0x19   : > { %p1146_p1 = pneg %p1396_p13 }
  0x1c   : > { %s1392_s12 = scalar_lea.hbm %s1824_s0, %s1035_s8  ;;  %s1149_s26 = scalar_lea.hbm %s1824_s0, 16384 }
  0x1d   : > { %s1144_s17 = scalar_lea.hbm %s1392_s12, 8192  ;;  %p1150_p4 = scmp.lt.u32.totalorder %s1392_s12, %s1824_s0 }
  0x1e   : > { %p1145_p0 = scmp.ne.s32.totalorder %s1392_s12, %s1144_s17  ;;  %p1151_p5 = scmp.lt.u32.totalorder %s1149_s26, %s1144_s17 }
  0x1f   : > { %p1153_p8 = scmp.lt.u32.totalorder %s1144_s17, %s1392_s12 }
  0x20   : > { %p1147_p2 = pnand %p1146_p1, %p1145_p0  ;;  %p1152_p7 = por %p1151_p5, %p1150_p4 }
  0x22   : > { %p1148_p3 = pneg %p1147_p2  ;;  %p1154_p10 = por %p1153_p8, %p1152_p7 }
  0x24   : > { %p1155_p9 = pnand %p1154_p10, %p1148_p3 }
  0x26   : > { %1158 = shalt.err (!%p1155_p9)
}
  0x27   : > { %s1159_s7 = scalar_lea.vmem %s1400_s14, 8192  ;;  %s1290_s9 = smov [#allocation3]  }
  0x28   : > { %p1160_p0 = scmp.ne.s32.totalorder %s1400_s14, %s1159_s7  ;;  %s1164_s10 = sshll.u32 %s1290_s9, 4  ;;  %s1165_s10 = int_to_ptr.vmem [resolvable:$false] %s1164_s10 }
  0x29   : > { %s1166_s11 = scalar_lea.vmem %s1165_s10, 16384  ;;  %p1167_p11 = scmp.lt.s32.totalorder %s1400_s14, %s1165_s10 }
  0x2a   : > { %p1162_p2 = pnand %p1160_p0, %p1146_p1  ;;  %p1168_p4 = scmp.lt.s32.totalorder %s1166_s11, %s1159_s7 }
  0x2c   : > { %p1163_p12 = pneg %p1162_p2  ;;  %p1169_p5 = por %p1168_p4, %p1167_p11 }
  0x2e   : > { %p1170_p7 = pnand %p1169_p5, %p1163_p12 }
  0x30   : > { %1173 = shalt.err (!%p1170_p7)
}
  0x31   : > { %s1291_s13 = smov 1024   ;;  %s1292_s17 = smov 64  }
  0x32   : > { %1048 = dma.hbm_to_vmem [thread:$0]  (!%p1396_p13), %s1392_s12, 8192, %s1400_s14, %s1402_s16, %s1291_s13, %s1291_s13, %s1292_s17  }
  0x33   : > { %p1004_p9 = scmp.ge.s32.totalorder %s1280_s21, 1  ;;  %p214_p1 = scmp.lt.s32.totalorder %s1280_s21, 3 }
  0x35   : > { %p215_p3 = pnand %p1004_p9, %p214_p1 }
  0x36   : > { %s1433_s23 = sand.u32 (!%p215_p3), 1, %s1272_s19  }
  0x37   : > { %218 = sbr.rel (%p215_p3) target bundleno = 569 (0x239), region = 32  ;;  %s1005_s25 = sshll.u32 (!%p215_p3), %s1433_s23, 9 }
  0x38   : > { %s221_s26 = scalar_lea.sflag (!%p215_p3), [#allocation4], %s1433_s23  ;;  %s1437_s28 = scalar_lea.vmem (!%p215_p3), [#allocation3], %s1005_s25 }
  0x3e   : > { %1255 = dma.done.wait (%p1372_p6), %s221_s26, 8192  }
  0x3f   : > { %1257 = vsyncadd (%p1372_p6), %s221_s26, 4294959104  ;;  %s1007_s12 = sshll.u32 %s1433_s23, 4  ;;  %p261_p11 = scmp.lt.s32.totalorder %s1350_s22, 1  ;;  %v1293_v0 = vmov 0.0  }
  0x40   : > { %266 = vst [vmem:[#allocation2] sm:$0xff] %v1293_v0  ;;  %267 = vst [vmem:[#allocation2 + $0x8] sm:$0xff] %v1293_v0  ;;  %s1451_s7 = scalar_lea.vmem [#allocation6], %s1005_s25  ;;  %s1453_s9 = scalar_lea.vmem [#allocation7], %s1007_s12 }
  0x41   : > { %268 = vst [vmem:[#allocation2 + $0x10] sm:$0xff] %v1293_v0  ;;  %269 = vst [vmem:[#allocation2 + $0x18] sm:$0xff] %v1293_v0  ;;  %s262_s14 = scalar_select %p261_p11, %s1350_s22, 1 }
  0x42   : > { %270 = vst [vmem:[#allocation2 + $0x20] sm:$0xff] %v1293_v0  ;;  %271 = vst [vmem:[#allocation2 + $0x28] sm:$0xff] %v1293_v0  ;;  %s1455_s10 = smov 0  }
  0x43   : > { %272 = vst [vmem:[#allocation2 + $0x30] sm:$0xff] %v1293_v0  ;;  %273 = vst [vmem:[#allocation2 + $0x38] sm:$0xff] %v1293_v0  ;;  %s1036_s15 = sshll.u32 %s262_s14, 6 }
  0x44   : > { %s1449_s29 = scalar_lea.vmem %s1817_s5, %s1036_s15 }
  0x45 LB: >> { %s1010_s11 = sshll.u32 %s1284_s10, 9  ;;  %s279_s10 = sadd.s32 1, %s1284_s10   ;;  %s1284_s10 = sphi %s1455_s10, %s279_s10  }
  0x46   : >> { %s281_s13 = sshra.s32 %s1010_s11, 7  ;;  %s293_s17 = sadd.s32 128, %s1010_s11 }
  0x47   : >> { %s1011_s26 = sshll.u32 %s281_s13, 3  ;;  %s294_s14 = sshra.s32 %s293_s17, 7  ;;  %v356_v18 = vld [vmem:[#allocation2] sm:$0xff]  ;;  %v357_v20 = vld [vmem:[#allocation2 + $0x8] sm:$0xff] }
  0x48   : >> { %s1462_s15 = scalar_lea.vmem %s1437_s28, %s1011_s26 [#allocation3]  ;;  %s1012_s25 = sshll.u32 %s294_s14, 3  ;;  %v358_v22 = vld [vmem:[#allocation2 + $0x10] sm:$0xff]  ;;  %v359_v33 = vld [vmem:[#allocation2 + $0x18] sm:$0xff] }
  0x49   : >> { %v285_v1 = vld [vmem:[%s1462_s15] sm:$0xff]  ;;  %s1466_s12 = scalar_lea.vmem %s1437_s28, %s1012_s25 [#allocation3]  ;;  %s314_s16 = sadd.s32 256, %s1010_s11  ;;  %v361_v45 = vld [vmem:[#allocation2 + $0x28] sm:$0xff] }
  0x4a   : >> { %v286_v2 = vld [vmem:[%s1462_s15 + $0x40] sm:$0xff]  ;;  %s315_s8 = sshra.s32 %s314_s16, 7  ;;  %s335_s13 = sadd.s32 384, %s1010_s11 }
  0x4b   : >> { %v287_v3 = vld [vmem:[%s1462_s15 + $0x80] sm:$0xff]  ;;  %s1013_s17 = sshll.u32 %s315_s8, 3  ;;  %s336_s26 = sshra.s32 %s335_s13, 7 }
  0x4c   : >> { %v298_v4 = vld [vmem:[%s1466_s12] sm:$0xff]  ;;  %s1477_s14 = scalar_lea.vmem %s1437_s28, %s1013_s17 [#allocation3]  ;;  %s1014_s25 = sshll.u32 %s336_s26, 3 }
  0x4d   : >> { %v299_v5 = vld [vmem:[%s1466_s12 + $0x40] sm:$0xff]  ;;  %v306_v7 = vadd.f32 %v298_v4, %v285_v1  ;;  %s1484_s11 = scalar_lea.vmem %s1437_s28, %s1014_s25 [#allocation3]  ;;  %v363_v4 = vld [vmem:[#allocation2 + $0x38] sm:$0xff]  ;;  %p276_p6 = scmp.ge.s32.totalorder %s279_s10, 2  }
  0x4e   : >> { %v300_v6 = vld [vmem:[%s1466_s12 + $0x80] sm:$0xff]  ;;  %v307_v8 = vadd.f32 %v299_v5, %v286_v2  ;;  %vm436_vm0 = vcmask (%p276_p6), 31744   ;;  %vm547_vm1 = vcmask (%p276_p6), 7168  }
  0x4f   : >> { %v308_v9 = vadd.f32 %v300_v6, %v287_v3  ;;  %v288_v10 = vld [vmem:[%s1462_s15 + $0xc0] sm:$0xff]  ;;  %v362_v3 = vld [vmem:[#allocation2 + $0x30] sm:$0xff] }
  0x50   : >> { %v301_v11 = vld [vmem:[%s1466_s12 + $0xc0] sm:$0xff] }
  0x51   : >> { %v289_v12 = vld [vmem:[%s1462_s15 + $0x100] sm:$0xff]  ;;  %v309_v13 = vadd.f32 %v301_v11, %v288_v10 }
  0x52   : >> { %v302_v14 = vld [vmem:[%s1466_s12 + $0x100] sm:$0xff] }
  0x53   : >> { %v290_v15 = vld [vmem:[%s1462_s15 + $0x140] sm:$0xff]  ;;  %v310_v23 = vadd.f32 %v302_v14, %v289_v12 }
  0x54   : >> { %v303_v16 = vld [vmem:[%s1466_s12 + $0x140] sm:$0xff] }
  0x55   : >> { %v319_v17 = vld [vmem:[%s1477_s14] sm:$0xff]  ;;  %v311_v24 = vadd.f32 %v303_v16, %v290_v15 }
  0x56   : >> { %v320_v19 = vld [vmem:[%s1477_s14 + $0x40] sm:$0xff]  ;;  %v327_v25 = vadd.f32 %v319_v17, %v306_v7 }
  0x57   : >> { %v321_v21 = vld [vmem:[%s1477_s14 + $0x80] sm:$0xff]  ;;  %v328_v27 = vadd.f32 %v320_v19, %v307_v8 }
  0x58   : >> { %v340_v26 = vld [vmem:[%s1484_s11] sm:$0xff]  ;;  %v329_v29 = vadd.f32 %v321_v21, %v308_v9 }
  0x59   : >> { %v341_v28 = vld [vmem:[%s1484_s11 + $0x40] sm:$0xff]  ;;  %v348_v35 = vadd.f32 %v340_v26, %v327_v25  ;;  %v415_v25 = vld [vmem:[%s1813_s1 + $0x18] sm:$0xff] (%p276_p6) }
  0x5a   : >> { %v342_v30 = vld [vmem:[%s1484_s11 + $0x80] sm:$0xff]  ;;  %v349_v36 = vadd.f32 %v341_v28, %v328_v27 }
  0x5b   : >> { %v322_v31 = vld [vmem:[%s1477_s14 + $0xc0] sm:$0xff]  ;;  %v350_v37 = vadd.f32 %v342_v30, %v329_v29  ;;  %v364_v48 = vadd.f32 %v356_v18, %v348_v35  ;;  %v417_v35 = vld [vmem:[%s1813_s1 + $0x28] sm:$0xff] (%p276_p6) }
  0x5c   : >> { %v343_v32 = vld [vmem:[%s1484_s11 + $0xc0] sm:$0xff]  ;;  %v330_v38 = vadd.f32 %v322_v31, %v309_v13  ;;  %v365_v49 = vadd.f32 %v357_v20, %v349_v36 }
  0x5d   : >> { %v323_v34 = vld [vmem:[%s1477_s14 + $0x100] sm:$0xff]  ;;  %v366_v50 = vadd.f32 %v358_v22, %v350_v37  ;;  %372 = vst [vmem:[#allocation2] sm:$0xff] %v364_v48  ;;  %v414_v22 = vld [vmem:[%s1813_s1 + $0x10] sm:$0xff] (%p276_p6) }
  0x5e   : >> { %v344_v39 = vld [vmem:[%s1484_s11 + $0x100] sm:$0xff]  ;;  %v331_v43 = vadd.f32 %v323_v34, %v310_v23  ;;  %v351_v51 = vadd.f32 %v343_v32, %v330_v38  ;;  %373 = vst [vmem:[#allocation2 + $0x8] sm:$0xff] %v365_v49  ;;  %v413_v23 = vld [vmem:[%s1813_s1 + $0x8] sm:$0xff] (%p276_p6)  ;;  %v419_v49 = vld [vmem:[%s1813_s1 + $0x38] sm:$0xff] (%p276_p6) }
  0x5f   : >> { %v360_v40 = vld [vmem:[#allocation2 + $0x20] sm:$0xff]  ;;  %374 = vst [vmem:[#allocation2 + $0x10] sm:$0xff] %v366_v50 }
  0x60   : >> { %v324_v41 = vld [vmem:[%s1477_s14 + $0x140] sm:$0xff]  ;;  %v352_v55 = vadd.f32 %v344_v39, %v331_v43  ;;  %v367_v60 = vadd.f32 %v359_v33, %v351_v51 }
  0x61   : >> { %v345_v42 = vld [vmem:[%s1484_s11 + $0x140] sm:$0xff]  ;;  %v332_v44 = vadd.f32 %v324_v41, %v311_v24 }
  0x62   : >> { %v291_v46 = vld [vmem:[%s1462_s15 + $0x180] sm:$0xff]  ;;  %v368_v63 = vadd.f32 %v360_v40, %v352_v55  ;;  %375 = vst [vmem:[#allocation2 + $0x18] sm:$0xff] %v367_v60 }
  0x63   : >> { %v304_v47 = vld [vmem:[%s1466_s12 + $0x180] sm:$0xff]  ;;  %v353_v56 = vadd.f32 %v345_v42, %v332_v44 }
  0x64   : >> { %v325_v52 = vld [vmem:[%s1477_s14 + $0x180] sm:$0xff]  ;;  %v312_v57 = vadd.f32 %v304_v47, %v291_v46  ;;  %376 = vst [vmem:[#allocation2 + $0x20] sm:$0xff] %v368_v63  ;;  %v418_v47 = vld [vmem:[%s1813_s1 + $0x30] sm:$0xff] (%p276_p6) }
  0x65   : >> { %v292_v53 = vld [vmem:[%s1462_s15 + $0x1c0] sm:$0xff]  ;;  %v369_v0 = vadd.f32 %v361_v45, %v353_v56  ;;  %v381_v11 = vld [vmem:[#allocation2 + $0x8] sm:$0xff] (%p276_p6) }
  0x66   : >> { %v305_v54 = vld [vmem:[%s1466_s12 + $0x1c0] sm:$0xff]  ;;  %v333_v1 = vadd.f32 %v325_v52, %v312_v57  ;;  %v382_v10 = vld [vmem:[#allocation2 + $0x10] sm:$0xff] (%p276_p6) }
  0x67   : >> { %v313_v58 = vadd.f32 %v305_v54, %v292_v53  ;;  %v326_v59 = vld [vmem:[%s1477_s14 + $0x1c0] sm:$0xff]  ;;  %377 = vst [vmem:[#allocation2 + $0x28] sm:$0xff] %v369_v0  ;;  %392 = vadd.xlane.f32.xlu1 (%p276_p6), %v382_v10  ;;  %v422_v10 = vld [vmem:[%s1814_s2 + $0x10] sm:$0xff] (%p276_p6) }
  0x68   : >> { %v346_v61 = vld [vmem:[%s1484_s11 + $0x180] sm:$0xff] }
  0x69   : >> { %v347_v62 = vld [vmem:[%s1484_s11 + $0x1c0] sm:$0xff]  ;;  %v334_v2 = vadd.f32 %v326_v59, %v313_v58  ;;  %v354_v5 = vadd.f32 %v346_v61, %v333_v1  ;;  %278 = sbr.rel (!%p276_p6) target bundleno = 69 (0x45), region = 127  ;;  %v383_v12 = vld [vmem:[#allocation2 + $0x18] sm:$0xff] (%p276_p6)  ;;  %s1612_s11 = smov (%p276_p6), 0  }
  0x6a   : > { %v380_v9 = vld [vmem:[#allocation2] sm:$0xff] (%p276_p6) }
  0x6b   : >> { %v355_v6 = vadd.f32 %v347_v62, %v334_v2  ;;  %v370_v7 = vadd.f32 %v362_v3, %v354_v5  ;;  %388 = vadd.xlane.f32.xlu0 (%p276_p6), %v380_v9  ;;  %394 = vadd.xlane.f32.xlu1 (%p276_p6), %v383_v12  ;;  %v384_v13 = vld [vmem:[#allocation2 + $0x20] sm:$0xff] (%p276_p6)  ;;  %v423_v9 = vld [vmem:[%s1814_s2 + $0x18] sm:$0xff] (%p276_p6) }
  0x6c   : > { %v412_v20 = vld [vmem:[%s1813_s1] sm:$0xff] (%p276_p6) }
  0x6d   : >> { %v371_v8 = vadd.f32 %v363_v4, %v355_v6  ;;  %378 = vst [vmem:[#allocation2 + $0x30] sm:$0xff] %v370_v7  ;;  %v416_v33 = vld [vmem:[%s1813_s1 + $0x20] sm:$0xff] (%p276_p6)  ;;  %v421_v6 = vld [vmem:[%s1814_s2 + $0x8] sm:$0xff] (%p276_p6) }
  0x6e   : > { %v385_v14 = vld [vmem:[#allocation2 + $0x28] sm:$0xff] (%p276_p6)  ;;  %v420_v7 = vld [vmem:[%s1814_s2] sm:$0xff] (%p276_p6) }
  0x6f   : >> { %379 = vst [vmem:[#allocation2 + $0x38] sm:$0xff] %v371_v8  ;;  %390 = vadd.xlane.f32.xlu0 (%p276_p6), %v381_v11  ;;  %398 = vadd.xlane.f32.xlu1 (%p276_p6), %v385_v14 }
  0x73   : > { %396 = vadd.xlane.f32.xlu0 %v384_v13 }
  0x74   : > { %v386_v15 = vld [vmem:[#allocation2 + $0x30] sm:$0xff] }
  0x76   : > { %v387_v16 = vld [vmem:[#allocation2 + $0x38] sm:$0xff] }
  0x77   : > { %400 = vadd.xlane.f32.xlu0 %v386_v15  ;;  %402 = vadd.xlane.f32.xlu1 %v387_v16 }
  0xf4   : > { %v393_v18 = vpop.xlane.xlu1 %392 }
  0xf5   : > { %v406_v21 = vmul.f32 0.0009765625, %v393_v18  ;;  %v424_v18 = vld [vmem:[%s1814_s2 + $0x20] sm:$0xff] }
  0xf7   : > { %v430_v30 = vmul.f32 %v414_v22, %v406_v21 }
  0xf8   : > { %v389_v17 = vpop.xlane.xlu0 %388  ;;  %v395_v26 = vpop.xlane.xlu1 %394 }
  0xf9   : > { %v404_v19 = vmul.f32 0.0009765625, %v389_v17  ;;  %v407_v29 = vmul.f32 0.0009765625, %v395_v26  ;;  %v440_v42 = vsel %vm436_vm0, %v430_v30, 0.0  ;;  %v425_v17 = vld [vmem:[%s1814_s2 + $0x28] sm:$0xff] }
  0xfb   : > { %v428_v27 = vmul.f32 %v412_v20, %v404_v19  ;;  %v431_v32 = vmul.f32 %v415_v25, %v407_v29 }
  0xfc   : > { %v391_v24 = vpop.xlane.xlu0 %390  ;;  %v399_v36 = vpop.xlane.xlu1 %398 }
  0xfd   : > { %v405_v28 = vmul.f32 0.0009765625, %v391_v24  ;;  %v437_v37 = vsel %vm436_vm0, %v428_v27, 0.0  ;;  %v409_v40 = vmul.f32 0.0009765625, %v399_v36  ;;  %v442_v43 = vsel %vm436_vm0, %v431_v32, 0.0  ;;  %v426_v24 = vld [vmem:[%s1814_s2 + $0x30] sm:$0xff] }
  0xff   : > { %v429_v31 = vmul.f32 %v413_v23, %v405_v28  ;;  %v433_v45 = vmul.f32 %v417_v35, %v409_v40  ;;  %v427_v23 = vld [vmem:[%s1814_s2 + $0x38] sm:$0xff] }
 0x100   : > { %v397_v34 = vpop.xlane.xlu0 %396 }
 0x101   : > { %v438_v38 = vsel %vm436_vm0, %v429_v31, 0.0  ;;  %v408_v39 = vmul.f32 0.0009765625, %v397_v34  ;;  %v446_v55 = vsel %vm436_vm0, %v433_v45, 0.0 }
 0x102   : > { %v439_v41 = vadd.f32 %v438_v38, %v437_v37 }
 0x103   : > { %v432_v44 = vmul.f32 %v416_v33, %v408_v39 }
 0x104   : > { %v441_v46 = vadd.f32 %v440_v42, %v439_v41  ;;  %v401_v48 = vpop.xlane.xlu0 %400  ;;  %v403_v50 = vpop.xlane.xlu1 %402 }
 0x105   : > { %v444_v51 = vsel %vm436_vm0, %v432_v44, 0.0  ;;  %v410_v52 = vmul.f32 0.0009765625, %v401_v48  ;;  %v411_v53 = vmul.f32 0.0009765625, %v403_v50 }
 0x106   : > { %v443_v54 = vadd.f32 %v442_v43, %v441_v46 }
 0x107   : > { %v434_v56 = vmul.f32 %v418_v47, %v410_v52  ;;  %v435_v57 = vmul.f32 %v419_v49, %v411_v53 }
 0x108   : > { %v445_v58 = vadd.f32 %v444_v51, %v443_v54 }
 0x109   : > { %v448_v59 = vsel %vm436_vm0, %v434_v56, 0.0  ;;  %v450_v61 = vsel %vm436_vm0, %v435_v57, 0.0 }
 0x10a   : > { %v447_v60 = vadd.f32 %v446_v55, %v445_v58 }
 0x10c   : > { %v449_v62 = vadd.f32 %v448_v59, %v447_v60 }
 0x10e   : > { %v451_v63 = vadd.f32 %v450_v61, %v449_v62 }
 0x110   : > { %v452_v0 = vrot.slane %v451_v63, 4 }
 0x112   : > { %v453_v1 = vadd.f32 %v452_v0, %v451_v63 }
 0x114   : > { %v454_v2 = vrot.slane %v453_v1, 2 }
 0x116   : > { %v455_v3 = vadd.f32 %v454_v2, %v453_v1 }
 0x118   : > { %v456_v4 = vrot.slane %v455_v3, 1 }
 0x11a   : > { %v457_v5 = vadd.f32 %v456_v4, %v455_v3 }
 0x11c   : > { %v458_v8 = vmax.f32 %v457_v5, 0.0 }
 0x11e   : > { %v460_v11 = vmul.f32 %v458_v8, %v421_v6  ;;  %v459_v12 = vmul.f32 %v458_v8, %v420_v7  ;;  %v462_v15 = vmul.f32 %v458_v8, %v423_v9  ;;  %v461_v16 = vmul.f32 %v458_v8, %v422_v10 }
 0x11f   : > { %v464_v21 = vmul.f32 %v458_v8, %v425_v17  ;;  %v463_v22 = vmul.f32 %v458_v8, %v424_v18  ;;  %v466_v27 = vmul.f32 %v458_v8, %v427_v23  ;;  %v465_v28 = vmul.f32 %v458_v8, %v426_v24 }
 0x120   : > { %v470_v13 = vsel %vm436_vm0, %v460_v11, 0.0  ;;  %v467_v14 = vsel %vm436_vm0, %v459_v12, 0.0  ;;  %v476_v19 = vsel %vm436_vm0, %v462_v15, 0.0  ;;  %v473_v20 = vsel %vm436_vm0, %v461_v16, 0.0 }
 0x121   : > { %471 = vadd.xlane.f32.xlu1 %v470_v13  ;;  %468 = vadd.xlane.f32.xlu0 %v467_v14  ;;  %v482_v25 = vsel %vm436_vm0, %v464_v21, 0.0  ;;  %v479_v26 = vsel %vm436_vm0, %v463_v22, 0.0  ;;  %v488_v29 = vsel %vm436_vm0, %v466_v27, 0.0  ;;  %v485_v30 = vsel %vm436_vm0, %v465_v28, 0.0 }
 0x125   : > { %477 = vadd.xlane.f32.xlu1 %v476_v19  ;;  %474 = vadd.xlane.f32.xlu0 %v473_v20 }
 0x129   : > { %483 = vadd.xlane.f32.xlu1 %v482_v25  ;;  %480 = vadd.xlane.f32.xlu0 %v479_v26 }
 0x12d   : > { %489 = vadd.xlane.f32.xlu1 %v488_v29  ;;  %486 = vadd.xlane.f32.xlu0 %v485_v30 }
 0x1ae   : > { %v472_v31 = vpop.xlane.xlu1 %471  ;;  %v469_v32 = vpop.xlane.xlu0 %468 }
 0x1af   : > { %v1016_v33 = vmul.f32 -2.0, %v472_v31  ;;  %v1015_v34 = vmul.f32 -2.0, %v469_v32 }
 0x1b1   : > { %v509_v35 = vmul.f32 1.442695, %v1016_v33  ;;  %v507_v36 = vmul.f32 1.442695, %v1015_v34 }
 0x1b2   : > { %v478_v37 = vpop.xlane.xlu1 %477  ;;  %v475_v38 = vpop.xlane.xlu0 %474 }
 0x1b3   : > { %1112 = vpow2.f32 %v509_v35  ;;  %v1018_v39 = vmul.f32 -2.0, %v478_v37  ;;  %v1017_v40 = vmul.f32 -2.0, %v475_v38 }
 0x1b4   : > { %1114 = vpow2.f32 %v507_v36 }
 0x1b5   : > { %v513_v41 = vmul.f32 1.442695, %v1018_v39  ;;  %v511_v42 = vmul.f32 1.442695, %v1017_v40 }
 0x1b6   : > { %v484_v43 = vpop.xlane.xlu1 %483  ;;  %v481_v44 = vpop.xlane.xlu0 %480 }
 0x1b7   : > { %1116 = vpow2.f32 %v513_v41  ;;  %v1020_v45 = vmul.f32 -2.0, %v484_v43  ;;  %v1019_v46 = vmul.f32 -2.0, %v481_v44 }
 0x1b8   : > { %1118 = vpow2.f32 %v511_v42 }
 0x1b9   : > { %v517_v47 = vmul.f32 1.442695, %v1020_v45  ;;  %v515_v48 = vmul.f32 1.442695, %v1019_v46 }
 0x1ba   : > { %v490_v49 = vpop.xlane.xlu1 %489  ;;  %v487_v50 = vpop.xlane.xlu0 %486 }
 0x1bb   : > { %1120 = vpow2.f32 %v517_v47  ;;  %v1022_v51 = vmul.f32 -2.0, %v490_v49  ;;  %v1021_v52 = vmul.f32 -2.0, %v487_v50 }
 0x1bc   : > { %1122 = vpow2.f32 %v515_v48 }
 0x1bd   : > { %v1113_v53 = vpop.eup %1112  ;;  %v521_v54 = vmul.f32 1.442695, %v1022_v51  ;;  %v519_v57 = vmul.f32 1.442695, %v1021_v52 }
 0x1be   : > { %v1115_v55 = vpop.eup %1114  ;;  %v524_v56 = vadd.f32 1.0, %v1113_v53 }
 0x1bf   : > { %v523_v58 = vadd.f32 1.0, %v1115_v55  ;;  %1124 = vpow2.f32 %v521_v54 }
 0x1c0   : > { %1126 = vrcp.f32 %v524_v56 }
 0x1c1   : > { %v1117_v59 = vpop.eup %1116  ;;  %1128 = vrcp.f32 %v523_v58 }
 0x1c2   : > { %v1119_v60 = vpop.eup %1118  ;;  %v526_v61 = vadd.f32 1.0, %v1117_v59  ;;  %1130 = vpow2.f32 %v519_v57 }
 0x1c3   : > { %v525_v62 = vadd.f32 1.0, %v1119_v60 }
 0x1c4   : > { %1132 = vrcp.f32 %v526_v61 }
 0x1c5   : > { %v1121_v63 = vpop.eup %1120  ;;  %1134 = vrcp.f32 %v525_v62 }
 0x1c6   : > { %v1123_v0 = vpop.eup %1122  ;;  %v528_v1 = vadd.f32 1.0, %v1121_v63 }
 0x1c7   : > { %v527_v2 = vadd.f32 1.0, %v1123_v0 }
 0x1c8   : > { %1136 = vrcp.f32 %v528_v1 }
 0x1c9   : > { %v1125_v3 = vpop.eup %1124  ;;  %1138 = vrcp.f32 %v527_v2 }
 0x1ca   : > { %v1572_v4 = vpop.eup %1126  ;;  %v530_v5 = vadd.f32 1.0, %v1125_v3 }
 0x1cb   : > { %v1574_v6 = vpop.eup %1128  ;;  %549 = vst.msk [vmem:[%s1449_s29 + $0x8] sm:$0xff] %vm547_vm1, %v1572_v4 }
 0x1cc   : > { %v1131_v7 = vpop.eup %1130  ;;  %548 = vst.msk [vmem:[%s1449_s29] sm:$0xff] %vm547_vm1, %v1574_v6  ;;  %1140 = vrcp.f32 %v530_v5 }
 0x1cd   : > { %v529_v8 = vadd.f32 1.0, %v1131_v7 }
 0x1ce   : > { %v1582_v9 = vpop.eup %1132 }
 0x1cf   : > { %v1584_v10 = vpop.eup %1134  ;;  %551 = vst.msk [vmem:[%s1449_s29 + $0x18] sm:$0xff] %vm547_vm1, %v1582_v9  ;;  %1142 = vrcp.f32 %v529_v8 }
 0x1d0   : > { %550 = vst.msk [vmem:[%s1449_s29 + $0x10] sm:$0xff] %vm547_vm1, %v1584_v10 }
 0x1d2   : > { %v1592_v11 = vpop.eup %1136 }
 0x1d3   : > { %v1594_v12 = vpop.eup %1138  ;;  %553 = vst.msk [vmem:[%s1449_s29 + $0x28] sm:$0xff] %vm547_vm1, %v1592_v11 }
 0x1d4   : > { %552 = vst.msk [vmem:[%s1449_s29 + $0x20] sm:$0xff] %vm547_vm1, %v1594_v12 }
 0x1d6   : > { %v1602_v13 = vpop.eup %1140 }
 0x1d7   : > { %555 = vst.msk [vmem:[%s1449_s29 + $0x38] sm:$0xff] %vm547_vm1, %v1602_v13 }
 0x1d9   : > { %v1607_v14 = vpop.eup %1142 }
 0x1da   : > { %554 = vst.msk [vmem:[%s1449_s29 + $0x30] sm:$0xff] %vm547_vm1, %v1607_v14 }
 0x1db LB: >> { %s1023_s10 = sshll.u32 %s1288_s11, 9  ;;  %v787_v30 = vlaneseq  ;;  %v1294_v37 = vmov 1983009808   ;;  %vm773_vm2 = vcmask 1040384   ;;  %s561_s11 = sadd.s32 1, %s1288_s11   ;;  %s1288_s11 = sphi %s1612_s11, %s561_s11  }
 0x1dc   : >> { %s1618_s15 = sshra.s32 %s1023_s10, 7  ;;  %v1651_v38 = vunpack.c.l.s4 %v1294_v37  ;;  %p558_p12 = scmp.ge.s32.totalorder %s561_s11, 2  }
 0x1dd   : >> { %s1024_s12 = sshll.u32 %s1618_s15, 3  ;;  %s1026_s8 = sshll.u32 %s1618_s15, 1 }
 0x1de   : >> { %s1622_s16 = scalar_lea.vmem %s1437_s28, %s1024_s12 [#allocation3]  ;;  %s1626_s29 = scalar_lea.vmem %s1451_s7, %s1024_s12 [#allocation6] }
 0x1df   : >> { %v567_v15 = vld [vmem:[%s1622_s16] sm:$0xff]  ;;  %v568_v16 = vld [vmem:[%s1622_s16 + $0x8] sm:$0xff]  ;;  %v569_v17 = vld [vmem:[%s1622_s16 + $0x10] sm:$0xff]  ;;  %s801_s13 = scalar_lea.vmem %s1453_s9, %s1026_s8 [#allocation7]  ;;  %s1037_s17 = sshll.u32 (%p558_p12), %s1350_s22, 13 }
 0x1e0   : >> { %v599_v18 = vmul.f32 %v1574_v6, %v567_v15  ;;  %v600_v19 = vmul.f32 %v1574_v6, %v568_v16  ;;  %v601_v20 = vmul.f32 %v1574_v6, %v569_v17  ;;  %v570_v21 = vld [vmem:[%s1622_s16 + $0x18] sm:$0xff]  ;;  %v571_v22 = vld [vmem:[%s1622_s16 + $0x40] sm:$0xff]  ;;  %v572_v23 = vld [vmem:[%s1622_s16 + $0x48] sm:$0xff]  ;;  %s1740_s25 = scalar_lea.hbm (%p558_p12), %s1815_s3, %s1037_s17  ;;  %s827_s10 = sshll.u32 (%p558_p12), %s1451_s7, 4  ;;  %s1743_s10 = int_to_ptr.vmem [resolvable:$true] %s827_s10 }
 0x1e1   : >> { %v602_v24 = vmul.f32 %v1574_v6, %v570_v21  ;;  %v603_v25 = vmul.f32 %v1572_v4, %v571_v22  ;;  %v604_v26 = vmul.f32 %v1572_v4, %v572_v23  ;;  %v573_v27 = vld [vmem:[%s1622_s16 + $0x50] sm:$0xff]  ;;  %v574_v28 = vld [vmem:[%s1622_s16 + $0x58] sm:$0xff]  ;;  %v575_v29 = vld [vmem:[%s1622_s16 + $0x80] sm:$0xff]  ;;  %s804_s15 = scalar_lea.sflag (%p558_p12), [#allocation5], %s1433_s23  ;;  %s1174_s12 = scalar_lea.vmem (%p558_p12), %s1743_s10, 8192 }
 0x1e2   : >> { %633 = vst [vmem:[%s1626_s29] sm:$0xff] %v599_v18  ;;  %634 = vst [vmem:[%s1626_s29 + $0x8] sm:$0xff] %v600_v19  ;;  %v605_v31 = vmul.f32 %v1572_v4, %v573_v27  ;;  %v606_v32 = vmul.f32 %v1572_v4, %v574_v28  ;;  %v607_v33 = vmul.f32 %v1584_v10, %v575_v29  ;;  %v576_v34 = vld [vmem:[%s1622_s16 + $0x88] sm:$0xff]  ;;  %v577_v35 = vld [vmem:[%s1622_s16 + $0x90] sm:$0xff]  ;;  %p1175_p13 = scmp.ne.s32.totalorder (%p558_p12), %s1743_s10, %s1174_s12  ;;  %p1826_p8 = scmp.ne.s32.totalorder (%p558_p12), %s1822_s30, 0 }
 0x1e3   : >> { %635 = vst [vmem:[%s1626_s29 + $0x10] sm:$0xff] %v601_v20  ;;  %v578_v36 = vld [vmem:[%s1622_s16 + $0x98] sm:$0xff]  ;;  %636 = vst [vmem:[%s1626_s29 + $0x18] sm:$0xff] %v602_v24  ;;  %v665_v39 = vadd.f32 %v603_v25, %v599_v18  ;;  %v721_v40 = vmax.f32 %v599_v18, %v603_v25  ;;  %v678_v41 = vadd.f32 %v604_v26, %v600_v19  ;;  %v579_v43 = vld [vmem:[%s1622_s16 + $0xc0] sm:$0xff]  ;;  %s1295_s28 = smov (%p558_p12), [#allocation6]  }
 0x1e4   : >> { %637 = vst [vmem:[%s1626_s29 + $0x40] sm:$0xff] %v603_v25  ;;  %638 = vst [vmem:[%s1626_s29 + $0x48] sm:$0xff] %v604_v26  ;;  %v734_v42 = vmax.f32 %v600_v19, %v604_v26  ;;  %v580_v44 = vld [vmem:[%s1622_s16 + $0xc8] sm:$0xff]  ;;  %v581_v45 = vld [vmem:[%s1622_s16 + $0xd0] sm:$0xff]  ;;  %v691_v46 = vadd.f32 %v605_v31, %v601_v20  ;;  %v747_v47 = vmax.f32 %v601_v20, %v605_v31  ;;  %p1176_p10 = pnand (%p558_p12), %p1175_p13, %p1826_p8  ;;  %s1178_s11 = sshll.u32 (%p558_p12), %s1295_s28, 4  ;;  %s1179_s11 = int_to_ptr.vmem [resolvable:$false] %s1178_s11 }
 0x1e5   : >> { %639 = vst [vmem:[%s1626_s29 + $0x50] sm:$0xff] %v605_v31  ;;  %640 = vst [vmem:[%s1626_s29 + $0x58] sm:$0xff] %v606_v32  ;;  %v704_v48 = vadd.f32 %v606_v32, %v602_v24  ;;  %v760_v49 = vmax.f32 %v602_v24, %v606_v32  ;;  %v666_v50 = vadd.f32 %v665_v39, %v607_v33  ;;  %v582_v58 = vld [vmem:[%s1622_s16 + $0xd8] sm:$0xff]  ;;  %v583_v59 = vld [vmem:[%s1622_s16 + $0x100] sm:$0xff]  ;;  %p1181_p2 = scmp.lt.s32.totalorder (%p558_p12), %s1743_s10, %s1179_s11 }
 0x1e6   : >> { %641 = vst [vmem:[%s1626_s29 + $0x80] sm:$0xff] %v607_v33  ;;  %v722_v51 = vmax.f32 %v721_v40, %v607_v33  ;;  %v608_v52 = vmul.f32 %v1584_v10, %v576_v34  ;;  %v609_v53 = vmul.f32 %v1584_v10, %v577_v35  ;;  %v610_v54 = vmul.f32 %v1584_v10, %v578_v36  ;;  %v584_v0 = vld [vmem:[%s1622_s16 + $0x108] sm:$0xff]  ;;  %v585_v1 = vld [vmem:[%s1622_s16 + $0x110] sm:$0xff]  ;;  %v586_v2 = vld [vmem:[%s1622_s16 + $0x118] sm:$0xff]  ;;  %p1177_p0 = pneg (%p558_p12), %p1176_p10 }
 0x1e7   : >> { %v611_v55 = vmul.f32 %v1582_v9, %v579_v43  ;;  %v612_v56 = vmul.f32 %v1582_v9, %v580_v44  ;;  %v613_v57 = vmul.f32 %v1582_v9, %v581_v45  ;;  %v587_v15 = vld [vmem:[%s1622_s16 + $0x140] sm:$0xff]  ;;  %v588_v16 = vld [vmem:[%s1622_s16 + $0x148] sm:$0xff]  ;;  %v589_v17 = vld [vmem:[%s1622_s16 + $0x150] sm:$0xff]  ;;  %v614_v22 = vmul.f32 %v1582_v9, %v582_v58 }
 0x1e8   : >> { %642 = vst [vmem:[%s1626_s29 + $0x88] sm:$0xff] %v608_v52  ;;  %v679_v60 = vadd.f32 %v678_v41, %v608_v52  ;;  %v735_v61 = vmax.f32 %v734_v42, %v608_v52  ;;  %643 = vst [vmem:[%s1626_s29 + $0x90] sm:$0xff] %v609_v53  ;;  %v692_v62 = vadd.f32 %v691_v46, %v609_v53  ;;  %v590_v35 = vld [vmem:[%s1622_s16 + $0x158] sm:$0xff]  ;;  %v591_v36 = vld [vmem:[%s1622_s16 + $0x180] sm:$0xff] }
 0x1e9   : >> { %v748_v63 = vmax.f32 %v747_v47, %v609_v53  ;;  %644 = vst [vmem:[%s1626_s29 + $0x98] sm:$0xff] %v610_v54  ;;  %v705_v3 = vadd.f32 %v704_v48, %v610_v54  ;;  %v761_v5 = vmax.f32 %v760_v49, %v610_v54  ;;  %645 = vst [vmem:[%s1626_s29 + $0xc0] sm:$0xff] %v611_v55  ;;  %v592_v42 = vld [vmem:[%s1622_s16 + $0x188] sm:$0xff]  ;;  %v593_v43 = vld [vmem:[%s1622_s16 + $0x190] sm:$0xff] }
 0x1ea   : >> { %v667_v7 = vadd.f32 %v666_v50, %v611_v55  ;;  %v723_v8 = vmax.f32 %v722_v51, %v611_v55  ;;  %646 = vst [vmem:[%s1626_s29 + $0xc8] sm:$0xff] %v612_v56  ;;  %647 = vst [vmem:[%s1626_s29 + $0xd0] sm:$0xff] %v613_v57  ;;  %v680_v18 = vadd.f32 %v679_v60, %v612_v56  ;;  %v594_v44 = vld [vmem:[%s1622_s16 + $0x198] sm:$0xff]  ;;  %v595_v49 = vld [vmem:[%s1622_s16 + $0x1c0] sm:$0xff] }
 0x1eb   : >> { %v736_v19 = vmax.f32 %v735_v61, %v612_v56  ;;  %v693_v20 = vadd.f32 %v692_v62, %v613_v57  ;;  %v749_v21 = vmax.f32 %v748_v63, %v613_v57  ;;  %v615_v23 = vmul.f32 %v1594_v12, %v583_v59  ;;  %648 = vst [vmem:[%s1626_s29 + $0xd8] sm:$0xff] %v614_v22  ;;  %v596_v50 = vld [vmem:[%s1622_s16 + $0x1c8] sm:$0xff]  ;;  %v597_v51 = vld [vmem:[%s1622_s16 + $0x1d0] sm:$0xff] }
 0x1ec   : >> { %v616_v24 = vmul.f32 %v1594_v12, %v584_v0  ;;  %v617_v25 = vmul.f32 %v1594_v12, %v585_v1  ;;  %v618_v26 = vmul.f32 %v1594_v12, %v586_v2  ;;  %v619_v27 = vmul.f32 %v1592_v11, %v587_v15 }
 0x1ed   : >> { %v620_v28 = vmul.f32 %v1592_v11, %v588_v16  ;;  %v621_v29 = vmul.f32 %v1592_v11, %v589_v17  ;;  %v706_v31 = vadd.f32 %v705_v3, %v614_v22  ;;  %v762_v32 = vmax.f32 %v761_v5, %v614_v22  ;;  %649 = vst [vmem:[%s1626_s29 + $0x100] sm:$0xff] %v615_v23  ;;  %v598_v16 = vld [vmem:[%s1622_s16 + $0x1d8] sm:$0xff]  ;;  %s1180_s16 = scalar_lea.vmem (%p558_p12), %s1179_s11, 16384 }
 0x1ee   : >> { %v668_v33 = vadd.f32 %v667_v7, %v615_v23  ;;  %v724_v34 = vmax.f32 %v723_v8, %v615_v23  ;;  %650 = vst [vmem:[%s1626_s29 + $0x108] sm:$0xff] %v616_v24  ;;  %651 = vst [vmem:[%s1626_s29 + $0x110] sm:$0xff] %v617_v25  ;;  %v681_v37 = vadd.f32 %v680_v18, %v616_v24  ;;  %p1182_p4 = scmp.lt.s32.totalorder (%p558_p12), %s1180_s16, %s1174_s12 }
 0x1ef   : >> { %v737_v39 = vmax.f32 %v736_v19, %v616_v24  ;;  %v694_v40 = vadd.f32 %v693_v20, %v617_v25  ;;  %v750_v41 = vmax.f32 %v749_v21, %v617_v25  ;;  %652 = vst [vmem:[%s1626_s29 + $0x118] sm:$0xff] %v618_v26  ;;  %653 = vst [vmem:[%s1626_s29 + $0x140] sm:$0xff] %v619_v27 }
 0x1f0   : >> { %654 = vst [vmem:[%s1626_s29 + $0x148] sm:$0xff] %v620_v28  ;;  %655 = vst [vmem:[%s1626_s29 + $0x150] sm:$0xff] %v621_v29  ;;  %v707_v45 = vadd.f32 %v706_v31, %v618_v26  ;;  %v763_v46 = vmax.f32 %v762_v32, %v618_v26  ;;  %v669_v47 = vadd.f32 %v668_v33, %v619_v27  ;;  %p1183_p5 = por (%p558_p12), %p1182_p4, %p1181_p2 }
 0x1f1   : >> { %v725_v48 = vmax.f32 %v724_v34, %v619_v27  ;;  %v682_v52 = vadd.f32 %v681_v37, %v620_v28  ;;  %v738_v53 = vmax.f32 %v737_v39, %v620_v28  ;;  %v695_v54 = vadd.f32 %v694_v40, %v621_v29 }
 0x1f2   : >> { %v751_v55 = vmax.f32 %v750_v41, %v621_v29  ;;  %v622_v56 = vmul.f32 %v1592_v11, %v590_v35  ;;  %v623_v57 = vmul.f32 %v1607_v14, %v591_v36  ;;  %v624_v58 = vmul.f32 %v1607_v14, %v592_v42  ;;  %p1184_p7 = pnand (%p558_p12), %p1183_p5, %p1177_p0 }
 0x1f3   : >> { %v625_v59 = vmul.f32 %v1607_v14, %v593_v43  ;;  %v626_v60 = vmul.f32 %v1607_v14, %v594_v44  ;;  %v627_v61 = vmul.f32 %v1602_v13, %v595_v49  ;;  %v628_v62 = vmul.f32 %v1602_v13, %v596_v50 }
 0x1f4   : >> { %v629_v63 = vmul.f32 %v1602_v13, %v597_v51  ;;  %656 = vst [vmem:[%s1626_s29 + $0x158] sm:$0xff] %v622_v56  ;;  %v708_v0 = vadd.f32 %v707_v45, %v622_v56  ;;  %v764_v1 = vmax.f32 %v763_v46, %v622_v56  ;;  %657 = vst [vmem:[%s1626_s29 + $0x180] sm:$0xff] %v623_v57  ;;  %v788_v28 = vshrl.u32 %v787_v30, 7 }
 0x1f5   : >> { %v670_v2 = vadd.f32 %v669_v47, %v623_v57  ;;  %v726_v3 = vmax.f32 %v725_v48, %v623_v57  ;;  %658 = vst [vmem:[%s1626_s29 + $0x188] sm:$0xff] %v624_v58  ;;  %659 = vst [vmem:[%s1626_s29 + $0x190] sm:$0xff] %v625_v59  ;;  %v683_v5 = vadd.f32 %v682_v52, %v624_v58 }
 0x1f6   : >> { %v739_v7 = vmax.f32 %v738_v53, %v624_v58  ;;  %v696_v8 = vadd.f32 %v695_v54, %v625_v59  ;;  %v752_v15 = vmax.f32 %v751_v55, %v625_v59  ;;  %660 = vst [vmem:[%s1626_s29 + $0x198] sm:$0xff] %v626_v60  ;;  %661 = vst [vmem:[%s1626_s29 + $0x1c0] sm:$0xff] %v627_v61 }
 0x1f7   : >> { %662 = vst [vmem:[%s1626_s29 + $0x1c8] sm:$0xff] %v628_v62  ;;  %663 = vst [vmem:[%s1626_s29 + $0x1d0] sm:$0xff] %v629_v63  ;;  %v709_v17 = vadd.f32 %v708_v0, %v626_v60  ;;  %v765_v18 = vmax.f32 %v764_v1, %v626_v60  ;;  %v671_v19 = vadd.f32 %v670_v2, %v627_v61 }
 0x1f8   : >> { %v727_v20 = vmax.f32 %v726_v3, %v627_v61  ;;  %v684_v21 = vadd.f32 %v683_v5, %v628_v62  ;;  %v740_v22 = vmax.f32 %v739_v7, %v628_v62  ;;  %v697_v23 = vadd.f32 %v696_v8, %v629_v63 }
 0x1f9   : >> { %v753_v24 = vmax.f32 %v752_v15, %v629_v63  ;;  %v672_v25 = vrot.slane %v671_v19, 4  ;;  %v630_v27 = vmul.f32 %v1602_v13, %v598_v16 }
 0x1fa   : >> { %v728_v26 = vrot.slane %v727_v20, 4  ;;  %v685_v29 = vrot.slane %v684_v21, 4  ;;  %v741_v31 = vrot.slane %v740_v22, 4  ;;  %v698_v32 = vrot.slane %v697_v23, 4 }
 0x1fb   : >> { %v754_v33 = vrot.slane %v753_v24, 4  ;;  %v673_v34 = vadd.f32 %v672_v25, %v671_v19  ;;  %664 = vst [vmem:[%s1626_s29 + $0x1d8] sm:$0xff] %v630_v27  ;;  %v710_v36 = vadd.f32 %v709_v17, %v630_v27  ;;  %v766_v37 = vmax.f32 %v765_v18, %v630_v27 }
 0x1fc   : >> { %v729_v35 = vmax.f32 %v727_v20, %v728_v26  ;;  %v686_v39 = vadd.f32 %v685_v29, %v684_v21  ;;  %v742_v40 = vmax.f32 %v740_v22, %v741_v31  ;;  %v699_v41 = vadd.f32 %v698_v32, %v697_v23 }
 0x1fd   : >> { %v755_v42 = vmax.f32 %v753_v24, %v754_v33  ;;  %v674_v43 = vrot.slane %v673_v34, 2  ;;  %v711_v45 = vrot.slane %v710_v36, 4  ;;  %v767_v46 = vrot.slane %v766_v37, 4 }
 0x1fe   : >> { %v730_v44 = vrot.slane %v729_v35, 2  ;;  %v687_v47 = vrot.slane %v686_v39, 2  ;;  %v743_v30 = vrot.slane %v742_v40, 2  ;;  %v700_v48 = vrot.slane %v699_v41, 2 }
 0x1ff   : >> { %v756_v49 = vrot.slane %v755_v42, 2  ;;  %v675_v50 = vadd.f32 %v674_v43, %v673_v34  ;;  %v712_v52 = vadd.f32 %v711_v45, %v710_v36  ;;  %v768_v53 = vmax.f32 %v766_v37, %v767_v46 }
 0x200   : >> { %v731_v51 = vmax.f32 %v729_v35, %v730_v44  ;;  %v688_v54 = vadd.f32 %v687_v47, %v686_v39  ;;  %v744_v55 = vmax.f32 %v742_v40, %v743_v30  ;;  %v701_v56 = vadd.f32 %v700_v48, %v699_v41 }
 0x201   : >> { %v757_v57 = vmax.f32 %v755_v42, %v756_v49  ;;  %v713_v58 = vrot.slane %v712_v52, 2  ;;  %v769_v59 = vrot.slane %v768_v53, 2  ;;  %v676_v60 = vrot.slane %v675_v50, 1 }
 0x202   : >> { %v732_v61 = vrot.slane %v731_v51, 1  ;;  %v689_v62 = vrot.slane %v688_v54, 1  ;;  %v702_v63 = vrot.slane %v701_v56, 1  ;;  %v745_v0 = vrot.slane %v744_v55, 1 }
 0x203   : >> { %v758_v1 = vrot.slane %v757_v57, 1  ;;  %v714_v2 = vadd.f32 %v713_v58, %v712_v52  ;;  %v770_v3 = vmax.f32 %v768_v53, %v769_v59  ;;  %v677_v5 = vadd.f32 %v676_v60, %v675_v50 }
 0x204   : >> { %v733_v7 = vmax.f32 %v731_v51, %v732_v61  ;;  %v690_v8 = vadd.f32 %v689_v62, %v688_v54  ;;  %v703_v15 = vadd.f32 %v702_v63, %v701_v56  ;;  %v746_v16 = vmax.f32 %v744_v55, %v745_v0 }
 0x205   : >> { %v786_v17 = vunpack.c.0.s8 %v1651_v38  ;;  %v715_v18 = vrot.slane %v714_v2, 1  ;;  %v717_v19 = vmul.f32 0.015625, %v677_v5  ;;  %v759_v20 = vmax.f32 %v757_v57, %v758_v1 }
 0x206   : >> { %v771_v21 = vrot.slane %v770_v3, 1  ;;  %v718_v22 = vmul.f32 0.015625, %v690_v8  ;;  %v719_v23 = vmul.f32 0.015625, %v703_v15 }
 0x207   : >> { %v716_v24 = vadd.f32 %v715_v18, %v714_v2  ;;  %v774_v26 = vsel %vm773_vm2, %v717_v19, %v733_v7  ;;  %v789_v29 = vsub.s32 %v786_v17, %v788_v28 }
 0x208   : >> { %v772_v25 = vmax.f32 %v770_v3, %v771_v21  ;;  %v775_v27 = vsel %vm773_vm2, %v718_v22, %v746_v16  ;;  %v776_v32 = vsel %vm773_vm2, %v719_v23, %v759_v20 }
 0x209   : >> { %v720_v31 = vmul.f32 0.015625, %v716_v24  ;;  %v782_v33 = vcombine.low %v774_v26, %v775_v27 }
 0x20b   : >> { %v777_v38 = vsel %vm773_vm2, %v720_v31, %v772_v25  ;;  %v790_v35 = vrot.slane %v782_v33, %v789_v29 }
 0x20c   : >> { %v783_v34 = vcombine.low %v776_v32, %v777_v38  ;;  %560 = sbr.rel (!%p558_p12) target bundleno = 475 (0x1db), region = 138 }
 0x20e   : >> { %v797_v36 = vrot.slane %v783_v34, %v789_v29 }
 0x210   : >> { %v798_v37 = vcombine.low %v790_v35, %v797_v36 }
 0x212   : >> { %802 = vst [vmem:[%s801_s13] sm:$0xff] %v798_v37 }
 0x213   : > { %1187 = shalt.err (!%p1184_p7)
}
 0x214   : > { %s1188_s7 = scalar_lea.hbm %s1740_s25, 8192  ;;  %s1192_s13 = scalar_lea.hbm %s1815_s3, 16384 }
 0x215   : > { %p1189_p9 = scmp.ne.s32.totalorder %s1740_s25, %s1188_s7  ;;  %p1193_p11 = scmp.lt.u32.totalorder %s1740_s25, %s1815_s3 }
 0x216   : > { %p1194_p6 = scmp.lt.u32.totalorder %s1192_s13, %s1188_s7  ;;  %p1196_p13 = scmp.lt.u32.totalorder %s1188_s7, %s1740_s25 }
 0x217   : > { %p1190_p1 = pnand %p1189_p9, %p1826_p8 }
 0x218   : > { %p1195_p12 = por %p1194_p6, %p1193_p11 }
 0x219   : > { %p1191_p3 = pneg %p1190_p1 }
 0x21a   : > { %p1197_p10 = por %p1196_p13, %p1195_p12 }
 0x21c   : > { %p1198_p0 = pnand %p1197_p10, %p1191_p3 }
 0x21e   : > { %1201 = shalt.err (!%p1198_p0)
}
 0x21f   : > { %s1296_s14 = smov 1024   ;;  %s1297_s12 = smov 64  }
 0x220   : > { %1041 = dma.vmem_to_hbm [thread:$0]  (%p1826_p8), %s1743_s10, 8192, %s1740_s25, %s804_s15, %s1296_s14, %s1296_s14, %s1297_s12  }
 0x221   : > { %s1038_s28 = sshll.u32 %s1350_s22, 8  ;;  %s844_s11 = sshll.u32 %s1453_s9, 4  ;;  %s845_s11 = int_to_ptr.vmem [resolvable:$true] %s844_s11 }
 0x222   : > { %s1774_s29 = scalar_lea.hbm %s1816_s4, %s1038_s28  ;;  %s809_s8 = scalar_lea.sflag [#allocation8], %s1433_s23 }
 0x223   : > { %s1202_s13 = scalar_lea.vmem %s845_s11, 256  ;;  %s1298_s17 = smov [#allocation7]  }
 0x224   : > { %p1203_p2 = scmp.ne.s32.totalorder %s845_s11, %s1202_s13  ;;  %s1206_s26 = sshll.u32 %s1298_s17, 4  ;;  %s1207_s26 = int_to_ptr.vmem [resolvable:$false] %s1206_s26 }
 0x225   : > { %s1208_s0 = scalar_lea.vmem %s1207_s26, 512  ;;  %p1209_p7 = scmp.lt.s32.totalorder %s845_s11, %s1207_s26 }
 0x226   : > { %p1204_p4 = pnand %p1203_p2, %p1826_p8  ;;  %p1210_p9 = scmp.lt.s32.totalorder %s1208_s0, %s1202_s13 }
 0x228   : > { %p1205_p5 = pneg %p1204_p4  ;;  %p1211_p1 = por %p1210_p9, %p1209_p7 }
 0x22a   : > { %p1212_p3 = pnand %p1211_p1, %p1205_p5 }
 0x22c   : > { %1215 = shalt.err (!%p1212_p3)
}
 0x22d   : > { %s1216_s22 = scalar_lea.hbm %s1774_s29, 256  ;;  %s1220_s25 = scalar_lea.hbm %s1816_s4, 512 }
 0x22e   : > { %p1217_p11 = scmp.ne.s32.totalorder %s1774_s29, %s1216_s22  ;;  %p1221_p13 = scmp.lt.u32.totalorder %s1774_s29, %s1816_s4 }
 0x22f   : > { %p1222_p10 = scmp.lt.u32.totalorder %s1220_s25, %s1216_s22  ;;  %p1224_p2 = scmp.lt.u32.totalorder %s1216_s22, %s1774_s29 }
 0x230   : > { %p1218_p6 = pnand %p1217_p11, %p1826_p8 }
 0x231   : > { %p1223_p0 = por %p1222_p10, %p1221_p13 }
 0x232   : > { %p1219_p12 = pneg %p1218_p6 }
 0x233   : > { %p1225_p4 = por %p1224_p2, %p1223_p0 }
 0x235   : > { %p1226_p5 = pnand %p1225_p4, %p1219_p12 }
 0x237   : > { %1229 = shalt.err (!%p1226_p5)
}
 0x238   : > { %1042 = dma.vmem_to_hbm [thread:$0]  (%p1826_p8), %s845_s11, 256, %s1774_s29, %s809_s8  }
 0x239 PF: > { %s859_s0 = sand.u32 1, %s1268_s18   ;;  %p1827_p7 = scmp.ne.s32.totalorder %s1823_s6, 0 }
 0x23a   : > { %p1828_p9 = scmp.ge.s32.totalorder %s1280_s21, 2  ;;  %s860_s14 = scalar_lea.sflag [#allocation5], %s859_s0 }
 0x23c   : > { %p1050_p1 = pnand %p1828_p9, %p1827_p7 }
 0x23e   : > { %1259 = dma.done.wait (!%p1050_p1), %s860_s14, 8192  }
 0x23f   : > { %1261 = vsyncadd (!%p1050_p1), %s860_s14, 4294959104  ;;  %s869_s12 = scalar_lea.sflag [#allocation8], %s859_s0 }
 0x240   : > { %1263 = dma.done.wait (!%p1050_p1), %s869_s12, 256  }
 0x241   : > { %1265 = vsyncadd (!%p1050_p1), %s869_s12, 4294967040  ;;  %p22_p8 = scmp.ge.s32.totalorder %s1354_s24, 4   ;;  %s1829_s18 = smov %s1272_s19 }
 0x242   : > { %s1830_s19 = smov %s1276_s20  ;;  %s1831_s20 = smov %s1366_s27 }
 0x243   : > { %s1832_s21 = smov %s1354_s24  ;;  %24 = sbr.rel (!%p22_p8) target bundleno = 9 (0x9), region = 149 }
 0x24a   :  { %882 = vsyncpa [#allocation4], 1 }
 0x24b   :  { %884 = vsyncpa [#allocation4 + $0x1], 1 }
 0x24c   :  { %885 = vsyncpa [#allocation5], 1 }
 0x24d   :  { %887 = vsyncpa [#allocation5 + $0x1], 1 }
 0x24e   :  { %888 = vsyncpa [#allocation8], 1 }
 0x24f   :  { %890 = vsyncpa [#allocation8 + $0x1], 1 }

</bundles_post_ra>
